<compile_context>
chip_gen: v5e
topology: v5e:2x2
jax: 0.10.0
libtpu: 0.0.40
codegen_flags: <defaults>
</compile_context>

<pallas_src>
import jax
import jax.numpy as jnp
from jax import lax
from jax.experimental import pallas as pl
from jax.experimental.pallas import tpu as pltpu


def _round_up(x: int, m: int) -> int:
    return ((x + m - 1) // m) * m


_VMEM_SPEC = pl.BlockSpec(memory_space=pltpu.MemorySpace.VMEM)
_HIGHEST = jax.lax.Precision.HIGHEST


# --------------------------------------------------------------------------
# Kernels
# --------------------------------------------------------------------------
def _rnn_step_kernel(x_ref, h_ref, w_xh_ref, b_hh_ref, w_ho_ref, b_ho_ref,
                     out_ref, h_new_ref, xh_ref):
    """One RNN step; all operands lane-padded (last dim multiple of 128).
    Single fused input matmul: [x_pad | h_pad] @ [W_ih; W_hh] + b_hh."""
    in_p = x_ref.shape[1]
    xh_ref[:, :in_p] = x_ref[...]
    xh_ref[:, in_p:] = h_ref[...]
    pre = (jnp.dot(xh_ref[...], w_xh_ref[...],
                   preferred_element_type=jnp.float32) + b_hh_ref[...])
    h_new = jnp.tanh(pre)
    h_new_ref[...] = h_new.astype(h_new_ref.dtype)
    out_ref[...] = (jnp.dot(h_new, w_ho_ref[...],
                            preferred_element_type=jnp.float32)
                    + b_ho_ref[...]).astype(out_ref.dtype)


def _rnn_seq_kernel(xproj_ref, h0_ref, w_hh_ref, h_out_ref, h_carry_ref):
    """TB recurrent steps per grid iteration (grid axis = time, "arbitrary").
    xproj_ref already contains x@W_ih + b_hh (hoisted, lane-dense GEMM); the
    output projection is hoisted to the wrapper, so the serial per-step chain
    is just one small MXU push + tanh + lane-dense store of h_t."""
    @pl.when(pl.program_id(0) == 0)
    def _():
        h_carry_ref[...] = h0_ref[...]

    w_hh = w_hh_ref[...]            # resident weight, loaded once per block
    tb = xproj_ref.shape[0]         # static time-block size

    def body(t, h):
        h_new = jnp.tanh(
            xproj_ref[t]
            + jnp.dot(h, w_hh, preferred_element_type=jnp.float32))
        h_out_ref[t] = h_new
        return h_new

    # Unrolled short fixed-trip loop: LLO can overlap step t's add/store with
    # step t+1's W_hh push; carry stays in vregs across steps.
    h_carry_ref[...] = lax.fori_loop(0, tb, body, h_carry_ref[...],
                                     unroll=True)


def _pick_time_block(seq_len, batch, hp, max_unroll=64, budget_bytes=2 << 20):
    """Largest divisor of seq_len whose per-block footprint stays small and
    whose unroll length is bounded.  For the demo (T=8) this is the whole
    sequence -> a single grid step (amortizes the ~0.35 µs/step overhead)."""
    tb = 1
    for d in range(1, min(seq_len, max_unroll) + 1):
        if seq_len % d == 0 and d * batch * hp * 4 <= budget_bytes:
            tb = d
    return tb


# --------------------------------------------------------------------------
# Module wrapper
# --------------------------------------------------------------------------
class PallasRNN:
    """Mirrors the PyTorch module: (output, new_hidden) = rnn(hidden, input).
    Extras: step_padded() keeps the hidden carry in its padded layout across
    calls (no per-call pad/slice), run_sequence() is the fused fast path."""

    def __init__(self, params):
        h_size = params["w_hh"].shape[0]
        in_size = params["w_ih"].shape[1]
        out_size = params["w_ho"].shape[0]
        ip = _round_up(in_size, 128)   # padded input lane width
        hp = _round_up(h_size, 128)    # padded hidden lane width
        op = _round_up(out_size, 128)  # padded output lane width

        self.input_size = in_size
        self.hidden_size = h_size
        self.output_size = out_size
        self._hp = hp

        f32 = jnp.float32
        # One-time weight prep: transpose to (in, out), zero-pad to lane width.
        # Padded rows/cols are exact zeros, so results are unchanged.
        w_ih_p = jnp.zeros((in_size, hp), f32).at[:, :h_size].set(
            params["w_ih"].astype(f32).T)
        w_hh_p = jnp.zeros((hp, hp), f32).at[:h_size, :h_size].set(
            params["w_hh"].astype(f32).T)
        b_hh_p = jnp.zeros((1, hp), f32).at[:, :h_size].set(
            params["b_hh"].astype(f32)[None, :])
        w_ho_p = jnp.zeros((hp, op), f32).at[:h_size, :out_size].set(
            params["w_ho"].astype(f32).T)
        b_ho_p = jnp.zeros((1, op), f32).at[:, :out_size].set(
            params["b_ho"].astype(f32)[None, :])
        # Stacked [W_ih; W_hh] so the step kernel does ONE input matmul.
        w_xh_p = (jnp.zeros((ip + hp, hp), f32)
                  .at[:in_size, :h_size].set(params["w_ih"].astype(f32).T)
                  .at[ip:ip + h_size, :h_size].set(params["w_hh"].astype(f32).T))

        def step_padded(h_pad, input_data):
            batch = input_data.shape[0]
            x_p = jnp.zeros((batch, ip), f32).at[:, :in_size].set(
                input_data.astype(f32))
            out_p, h_new_p = pl.pallas_call(
                _rnn_step_kernel,
                out_shape=(
                    jax.ShapeDtypeStruct((batch, op), f32),
                    jax.ShapeDtypeStruct((batch, hp), f32),
                ),
                in_specs=[_VMEM_SPEC] * 6,
                out_specs=(_VMEM_SPEC, _VMEM_SPEC),
                scratch_shapes=[pltpu.VMEM((batch, ip + hp), f32)],
                # Reuse the padded hidden-state HBM buffer for the new hidden.
                input_output_aliases={1: 1},
            )(x_p, h_pad, w_xh_p, b_hh_p, w_ho_p, b_ho_p)
            return out_p[:, :out_size], h_new_p

        def step(hidden_state, input_data):
            batch = input_data.shape[0]
            h_pad = jnp.zeros((batch, hp), f32).at[:, :h_size].set(
                hidden_state.astype(f32))
            out, h_new_p = step_padded(h_pad, input_data)
            return out, h_new_p[:, :h_size]

        def sequence(hidden_state, inputs):
            seq_len, batch, _ = inputs.shape
            # Hoisted input projection for ALL timesteps as one lane-dense GEMM
            # (b_hh folded in), at HIGHEST precision for f32 parity.
            xproj = (jnp.dot(inputs.astype(f32).reshape(seq_len * batch, in_size),
                             w_ih_p, precision=_HIGHEST)
                     + b_hh_p).reshape(seq_len, batch, hp)
            h0_p = jnp.zeros((batch, hp), f32).at[:, :h_size].set(
                hidden_state.astype(f32))

            tb = _pick_time_block(seq_len, batch, hp)
            h_all = pl.pallas_call(
                _rnn_seq_kernel,
                out_shape=jax.ShapeDtypeStruct((seq_len, batch, hp), f32),
                grid=(seq_len // tb,),
                in_specs=[
                    pl.BlockSpec((tb, batch, hp), lambda i: (i, 0, 0)),  # xproj block
                    pl.BlockSpec((batch, hp), lambda i: (0, 0)),         # h0
                    pl.BlockSpec((hp, hp), lambda i: (0, 0)),            # W_hh resident
                ],
                out_specs=pl.BlockSpec((tb, batch, hp), lambda i: (i, 0, 0)),
                scratch_shapes=[pltpu.VMEM((batch, hp), f32)],           # hidden carry
                compiler_params=pltpu.CompilerParams(
                    dimension_semantics=("arbitrary",)),                 # recurrent axis
            )(xproj, h0_p, w_hh_p)

            # Hoisted output projection: one lane-dense (T*B, hp) x (hp, op) GEMM.
            outs = (jnp.dot(h_all.reshape(seq_len * batch, hp), w_ho_p,
                            precision=_HIGHEST)
                    + b_ho_p).reshape(seq_len, batch, op)
            return outs[:, :, :out_size], h_all[-1, :, :h_size]

        self._step = jax.jit(step)
        self._step_padded = jax.jit(step_padded)
        self._sequence = jax.jit(sequence)

    # ---- module-compatible API -------------------------------------------
    def __call__(self, hidden_state, input_data):
        return self._step(hidden_state, input_data)

    def hidden_to_zeros(self, batch_size=1):
        return jnp.zeros((batch_size, self.hidden_size), jnp.float32)

    # ---- fast paths ---------------------------------------------------------
    def hidden_to_zeros_padded(self, batch_size=1):
        return jnp.zeros((batch_size, self._hp), jnp.float32)

    def step_padded(self, h_pad, input_data):
        """Padded-state step: avoids per-call pad/scatter + slice of hidden."""
        return self._step_padded(h_pad, input_data)

    def run_sequence(self, hidden_state, inputs):
        """Fused T-step recurrence, inputs shaped (T, B, input_size)."""
        return self._sequence(hidden_state, inputs)


# --------------------------------------------------------------------------
# Params & pure-JAX reference (PyTorch layout / semantics)
# --------------------------------------------------------------------------
def init_params(key, input_size, hidden_size, output_size):
    k1, k2, k3, k4, k5 = jax.random.split(key, 5)
    s_ih = 1.0 / jnp.sqrt(input_size)
    s_hh = 1.0 / jnp.sqrt(hidden_size)
    s_ho = 1.0 / jnp.sqrt(hidden_size)
    return {
        "w_ih": jax.random.uniform(k1, (hidden_size, input_size), jnp.float32, -s_ih, s_ih),
        "w_hh": jax.random.uniform(k2, (hidden_size, hidden_size), jnp.float32, -s_hh, s_hh),
        "b_hh": jax.random.uniform(k3, (hidden_size,), jnp.float32, -s_hh, s_hh),
        "w_ho": jax.random.uniform(k4, (output_size, hidden_size), jnp.float32, -s_ho, s_ho),
        "b_ho": jax.random.uniform(k5, (output_size,), jnp.float32, -s_ho, s_ho),
    }


def rnn_step_ref(hidden_state, input_data, params):
    x_proj = jnp.dot(input_data, params["w_ih"].T, precision=_HIGHEST)
    h_proj = jnp.dot(hidden_state, params["w_hh"].T, precision=_HIGHEST) + params["b_hh"]
    h_new = jnp.tanh(h_proj + x_proj)
    out = jnp.dot(h_new, params["w_ho"].T, precision=_HIGHEST) + params["b_ho"]
    return out, h_new


def rnn_sequence_ref(hidden_state, inputs, params):
    outs = []
    h = hidden_state
    for t in range(inputs.shape[0]):
        o, h = rnn_step_ref(h, inputs[t], params)
        outs.append(o)
    return jnp.stack(outs, axis=0), h


# --------------------------------------------------------------------------
if __name__ == "__main__":
    input_size, hidden_size, output_size = 16, 32, 8
    batch_size, seq_len = 8, 8

    key = jax.random.PRNGKey(0)
    kp, kx, ks = jax.random.split(key, 3)
    params = init_params(kp, input_size, hidden_size, output_size)

    rnn = PallasRNN(params)
    h0 = rnn.hidden_to_zeros(batch_size)

    # --- single step (exact forward() semantics of the PyTorch module) ---
    x = jax.random.normal(kx, (batch_size, input_size), jnp.float32)
    out, h_new = jax.block_until_ready(rnn(h0, x))
    out_r, h_new_r = rnn_step_ref(h0, x, params)
    assert out.shape == (batch_size, output_size)
    assert h_new.shape == (batch_size, hidden_size)
    assert jnp.allclose(out, out_r, atol=1e-4, rtol=1e-4)
    assert jnp.allclose(h_new, h_new_r, atol=1e-4, rtol=1e-4)

    # --- padded-state step API (no per-call pad/slice of the hidden carry) ---
    h_pad = rnn.hidden_to_zeros_padded(batch_size)
    out_p, h_pad_new = jax.block_until_ready(rnn.step_padded(h_pad, x))
    assert jnp.allclose(out_p, out_r, atol=1e-4, rtol=1e-4)
    assert jnp.allclose(h_pad_new[:, :hidden_size], h_new_r, atol=1e-4, rtol=1e-4)

    # --- fused sequence: T recurrent steps inside ONE pallas_call grid ---
    xs = jax.random.normal(ks, (seq_len, batch_size, input_size), jnp.float32)
    outs, h_last = jax.block_until_ready(rnn.run_sequence(h0, xs))
    outs_r, h_last_r = rnn_sequence_ref(h0, xs, params)
    assert outs.shape == (seq_len, batch_size, output_size)
    assert h_last.shape == (batch_size, hidden_size)
    assert jnp.allclose(outs, outs_r, atol=1e-4, rtol=1e-4)
    assert jnp.allclose(h_last, h_last_r, atol=1e-4, rtol=1e-4)

    print("KERNEL_OK")
</pallas_src>

<mosaic_0001>
module attributes {stable_mosaic.version = 11 : i64} {
  func.func @_rnn_step_kernel(%arg0: memref<8x128xf32, #tpu.memory_space<vmem>>, %arg1: memref<8x128xf32, #tpu.memory_space<vmem>>, %arg2: memref<256x128xf32, #tpu.memory_space<vmem>>, %arg3: memref<1x128xf32, #tpu.memory_space<vmem>>, %arg4: memref<128x128xf32, #tpu.memory_space<vmem>>, %arg5: memref<1x128xf32, #tpu.memory_space<vmem>>, %arg6: memref<8x128xf32, #tpu.memory_space<vmem>>, %arg7: memref<8x128xf32, #tpu.memory_space<vmem>>, %arg8: memref<8x256xf32, #tpu.memory_space<vmem>>) attributes {dimension_semantics = [], scalar_prefetch = 0 : i64, scratch_operands = 1 : i64, tpu.core_type = #tpu.core_type<tc>} {
    %c0 = arith.constant 0 : index
    %c0_0 = arith.constant 0 : index
    %0 = vector.load %arg0[%c0, %c0_0] : memref<8x128xf32, #tpu.memory_space<vmem>>, vector<8x128xf32>
    %c0_1 = arith.constant 0 : index
    %c0_2 = arith.constant 0 : index
    %1 = vector.load %arg8[%c0_1, %c0_2] : memref<8x256xf32, #tpu.memory_space<vmem>>, vector<8x128xf32>
    tpu.vector_store %arg8[%c0_1, %c0_2], %0 {strides = array<i32>} : memref<8x256xf32, #tpu.memory_space<vmem>>, vector<8x128xf32>,
    %c0_3 = arith.constant 0 : index
    %c0_4 = arith.constant 0 : index
    %2 = vector.load %arg1[%c0_3, %c0_4] : memref<8x128xf32, #tpu.memory_space<vmem>>, vector<8x128xf32>
    %c0_5 = arith.constant 0 : index
    %c128 = arith.constant 128 : index
    %3 = vector.load %arg8[%c0_5, %c128] : memref<8x256xf32, #tpu.memory_space<vmem>>, vector<8x128xf32>
    tpu.vector_store %arg8[%c0_5, %c128], %2 {strides = array<i32>} : memref<8x256xf32, #tpu.memory_space<vmem>>, vector<8x128xf32>,
    %c0_6 = arith.constant 0 : index
    %c0_7 = arith.constant 0 : index
    %4 = vector.load %arg8[%c0_6, %c0_7] : memref<8x256xf32, #tpu.memory_space<vmem>>, vector<8x256xf32>
    %c0_8 = arith.constant 0 : index
    %c0_9 = arith.constant 0 : index
    %5 = vector.load %arg2[%c0_8, %c0_9] : memref<256x128xf32, #tpu.memory_space<vmem>>, vector<256x128xf32>
    %cst = arith.constant dense<0.000000e+00> : vector<8x128xf32>
    %6 = tpu.matmul %4, %5, %cst {dimension_numbers = #tpu.dot_dimension_numbers<[1], [0], [0], [1], [0, 0, 1, 1], [], []>} : vector<8x256xf32>, vector<256x128xf32>, vector<8x128xf32> -> vector<8x128xf32>
    %c0_10 = arith.constant 0 : index
    %c0_11 = arith.constant 0 : index
    %7 = vector.load %arg3[%c0_10, %c0_11] : memref<1x128xf32, #tpu.memory_space<vmem>>, vector<1x128xf32>
    %8 = vector.broadcast %7 : vector<1x128xf32> to vector<8x128xf32>
    %9 = arith.addf %6, %8 : vector<8x128xf32>
    %10 = math.tanh %9 : vector<8x128xf32>
    %c0_12 = arith.constant 0 : index
    %c0_13 = arith.constant 0 : index
    %11 = vector.load %arg7[%c0_12, %c0_13] : memref<8x128xf32, #tpu.memory_space<vmem>>, vector<8x128xf32>
    tpu.vector_store %arg7[%c0_12, %c0_13], %10 {strides = array<i32>} : memref<8x128xf32, #tpu.memory_space<vmem>>, vector<8x128xf32>,
    %c0_14 = arith.constant 0 : index
    %c0_15 = arith.constant 0 : index
    %12 = vector.load %arg4[%c0_14, %c0_15] : memref<128x128xf32, #tpu.memory_space<vmem>>, vector<128x128xf32>
    %cst_16 = arith.constant dense<0.000000e+00> : vector<8x128xf32>
    %13 = tpu.matmul %10, %12, %cst_16 {dimension_numbers = #tpu.dot_dimension_numbers<[1], [0], [0], [1], [0, 0, 1, 1], [], []>} : vector<8x128xf32>, vector<128x128xf32>, vector<8x128xf32> -> vector<8x128xf32>
    %c0_17 = arith.constant 0 : index
    %c0_18 = arith.constant 0 : index
    %14 = vector.load %arg5[%c0_17, %c0_18] : memref<1x128xf32, #tpu.memory_space<vmem>>, vector<1x128xf32>
    %15 = vector.broadcast %14 : vector<1x128xf32> to vector<8x128xf32>
    %16 = arith.addf %13, %15 : vector<8x128xf32>
    %c0_19 = arith.constant 0 : index
    %c0_20 = arith.constant 0 : index
    %17 = vector.load %arg6[%c0_19, %c0_20] : memref<8x128xf32, #tpu.memory_space<vmem>>, vector<8x128xf32>
    tpu.vector_store %arg6[%c0_19, %c0_20], %16 {strides = array<i32>} : memref<8x128xf32, #tpu.memory_space<vmem>>, vector<8x128xf32>,
    return
  }
}

</mosaic_0001>

<bundles_post_ra>
// kernel: step.1
= control target key start
LH: loop header
LB: loop body
LE: loop exit
PB: predicated region body
PF: predicated region fallthrough
CT: control target
= control target key end

     0   :  { %13 = vsyncpa [#allocation4], 0  ;;  %s361_s0 = inlined_call_operand.vmem [shape: f32[8,128], index: 0, kind: input, shape index: {}]   ;;  %s362_s1 = inlined_call_operand.vmem [shape: f32[8,128], index: 1, kind: input, shape index: {}, may-alias: {1,7}]   ;;  %s363_s2 = inlined_call_operand.hbm [shape: f32[256,128], index: 2, kind: input, shape index: {}]   ;;  %s364_s3 = inlined_call_operand.vmem [shape: f32[1,128], index: 3, kind: input, shape index: {}]   ;;  %s365_s4 = inlined_call_operand.hbm [shape: f32[128,128], index: 4, kind: input, shape index: {}]   ;;  %s366_s5 = inlined_call_operand.vmem [shape: f32[1,128], index: 5, kind: input, shape index: {}]   ;;  %s367_s6 = inlined_call_operand.hbm [shape: f32[8,128], index: 6, kind: output, shape index: {0}]   ;;  %s368_s7 = inlined_call_operand.vmem [shape: f32[8,128], index: 7, kind: output, shape index: {1}, may-alias: {1,7}]  }
   0x1   :  { %14 = vsyncpa [#allocation7], 0 }
   0x2   :  { %15 = vsyncpa [#allocation5], 0  ;;  %s24_s26 = sshll.u32 %s363_s2, 4  ;;  %s292_s27 = smov [#allocation3]   ;;  %s25_s26 = int_to_ptr.hbm [resolvable:$true] %s24_s26 }
   0x3   :  { %s26_s28 = sshll.u32 %s292_s27, 4  ;;  %s39_s8 = sshll.u32 %s365_s4, 4  ;;  %s27_s28 = int_to_ptr.vmem [resolvable:$true] %s26_s28  ;;  %s40_s8 = int_to_ptr.hbm [resolvable:$true] %s39_s8 }
   0x4   :  { %s293_s9 = smov 128   ;;  %s294_s10 = smov 8  }
   0x5   :  { %32 = dma.hbm_to_vmem [thread:$0]  %s25_s26, 4096, %s27_s28, [#allocation4], %s293_s9, %s293_s9, %s294_s10  }
   0x6   :  { %s295_s11 = smov [#allocation6]  }
   0x7   :  { %s41_s12 = sshll.u32 %s295_s11, 4  ;;  %s42_s12 = int_to_ptr.vmem [resolvable:$true] %s41_s12 }
   0x8   :  { %47 = dma.hbm_to_vmem [thread:$0]  %s40_s8, 2048, %s42_s12, [#allocation7], %s293_s9, %s293_s9, %s294_s10  }
   0x9   :  { %286 = dma.done.wait [#allocation4], 4096  }
   0xa   :  { %287 = vsyncadd [#allocation4], 4294963200 }
   0xb   :  { %288 = dma.done.wait [#allocation7], 2048  }
   0xc   :  { %289 = vsyncadd [#allocation7], 4294965248  ;;  %v79_v0 = vld [vmem:[#allocation3 + $0x78] sm:$0xff]  ;;  %v78_v1 = vld [vmem:[#allocation3 + $0x70] sm:$0xff]  ;;  %s296_s19 = smov [#allocation8]  }
   0xd   :  { %v95_v2 = vld [vmem:[#allocation3 + $0xf8] sm:$0xff]  ;;  %100 = vmatpush.msra.mxu0 %v79_v0  ;;  %v94_v3 = vld [vmem:[#allocation3 + $0xf0] sm:$0xff]  ;;  %v77_v4 = vld [vmem:[#allocation3 + $0x68] sm:$0xff]  ;;  %s188_s20 = sshll.u32 %s296_s19, 4  ;;  %s189_s20 = int_to_ptr.vmem [resolvable:$true] %s188_s20 }
   0xe   :  { %120 = vmatpush.msra.mxu1 %v95_v2  ;;  %v93_v5 = vld [vmem:[#allocation3 + $0xe8] sm:$0xff]  ;;  %v76_v6 = vld [vmem:[#allocation3 + $0x60] sm:$0xff]  ;;  %v75_v8 = vld [vmem:[#allocation3 + $0x58] sm:$0xff] }
   0xf   :  { %101 = vmatpush.msra.mxu0 %v78_v1  ;;  %v92_v7 = vld [vmem:[#allocation3 + $0xe0] sm:$0xff]  ;;  %v91_v9 = vld [vmem:[#allocation3 + $0xd8] sm:$0xff]  ;;  %v74_v10 = vld [vmem:[#allocation3 + $0x50] sm:$0xff] }
  0x10   :  { %121 = vmatpush.msra.mxu1 %v94_v3  ;;  %v90_v11 = vld [vmem:[#allocation3 + $0xd0] sm:$0xff]  ;;  %v73_v12 = vld [vmem:[#allocation3 + $0x48] sm:$0xff]  ;;  %v157_v14 = vld [vmem:[#allocation6 + $0x78] sm:$0xff] }
  0x11   :  { %102 = vmatpush.msra.mxu0 %v77_v4  ;;  %v89_v13 = vld [vmem:[#allocation3 + $0xc8] sm:$0xff]  ;;  %v156_v15 = vld [vmem:[#allocation6 + $0x70] sm:$0xff]  ;;  %v72_v16 = vld [vmem:[#allocation3 + $0x40] sm:$0xff]  ;;  %162 = vmatpush.msra.mxu2 %v157_v14 }
  0x12   :  { %122 = vmatpush.msra.mxu1 %v93_v5  ;;  %v88_v17 = vld [vmem:[#allocation3 + $0xc0] sm:$0xff]  ;;  %v155_v18 = vld [vmem:[#allocation6 + $0x68] sm:$0xff]  ;;  %v71_v19 = vld [vmem:[#allocation3 + $0x38] sm:$0xff] }
  0x13   :  { %103 = vmatpush.msra.mxu0 %v76_v6  ;;  %v87_v20 = vld [vmem:[#allocation3 + $0xb8] sm:$0xff]  ;;  %163 = vmatpush.msra.mxu2 %v156_v15  ;;  %v154_v21 = vld [vmem:[#allocation6 + $0x60] sm:$0xff]  ;;  %v70_v22 = vld [vmem:[#allocation3 + $0x30] sm:$0xff] }
  0x14   :  { %123 = vmatpush.msra.mxu1 %v92_v7  ;;  %v86_v23 = vld [vmem:[#allocation3 + $0xb0] sm:$0xff]  ;;  %v153_v24 = vld [vmem:[#allocation6 + $0x58] sm:$0xff]  ;;  %v69_v25 = vld [vmem:[#allocation3 + $0x28] sm:$0xff] }
  0x15   :  { %104 = vmatpush.msra.mxu0 %v75_v8  ;;  %164 = vmatpush.msra.mxu2 %v155_v18  ;;  %v85_v26 = vld [vmem:[#allocation3 + $0xa8] sm:$0xff]  ;;  %v152_v27 = vld [vmem:[#allocation6 + $0x50] sm:$0xff]  ;;  %v68_v28 = vld [vmem:[#allocation3 + $0x20] sm:$0xff] }
  0x16   :  { %124 = vmatpush.msra.mxu1 %v91_v9  ;;  %v84_v29 = vld [vmem:[#allocation3 + $0xa0] sm:$0xff]  ;;  %v151_v30 = vld [vmem:[#allocation6 + $0x48] sm:$0xff]  ;;  %v67_v31 = vld [vmem:[#allocation3 + $0x18] sm:$0xff] }
  0x17   :  { %105 = vmatpush.msra.mxu0 %v74_v10  ;;  %165 = vmatpush.msra.mxu2 %v154_v21  ;;  %v83_v32 = vld [vmem:[#allocation3 + $0x98] sm:$0xff]  ;;  %v150_v33 = vld [vmem:[#allocation6 + $0x40] sm:$0xff]  ;;  %v66_v34 = vld [vmem:[#allocation3 + $0x10] sm:$0xff] }
  0x18   :  { %125 = vmatpush.msra.mxu1 %v90_v11  ;;  %v82_v35 = vld [vmem:[#allocation3 + $0x90] sm:$0xff]  ;;  %v149_v36 = vld [vmem:[#allocation6 + $0x38] sm:$0xff]  ;;  %v65_v37 = vld [vmem:[#allocation3 + $0x8] sm:$0xff] }
  0x19   :  { %106 = vmatpush.msra.mxu0 %v73_v12  ;;  %166 = vmatpush.msra.mxu2 %v153_v24  ;;  %v81_v38 = vld [vmem:[#allocation3 + $0x88] sm:$0xff]  ;;  %v148_v39 = vld [vmem:[#allocation6 + $0x30] sm:$0xff]  ;;  %v64_v40 = vld [vmem:[#allocation3] sm:$0xff] }
  0x1a   :  { %126 = vmatpush.msra.mxu1 %v89_v13  ;;  %v80_v41 = vld [vmem:[#allocation3 + $0x80] sm:$0xff]  ;;  %v147_v44 = vld [vmem:[#allocation6 + $0x28] sm:$0xff]  ;;  %v145_v46 = vld [vmem:[#allocation6 + $0x18] sm:$0xff] }
  0x1b   :  { %107 = vmatpush.msra.mxu0 %v72_v16  ;;  %167 = vmatpush.msra.mxu2 %v152_v27  ;;  %v58_v42 = vld [vmem:[%s361_s0] sm:$0xff]  ;;  %v144_v47 = vld [vmem:[#allocation6 + $0x10] sm:$0xff]  ;;  %v143_v48 = vld [vmem:[#allocation6 + $0x8] sm:$0xff] }
  0x1c   :  { %127 = vmatpush.msra.mxu1 %v88_v17  ;;  %v60_v43 = vld [vmem:[%s362_s1] sm:$0xff] }
  0x1d   :  { %108 = vmatpush.msra.mxu0 %v71_v19  ;;  %168 = vmatpush.msra.mxu2 %v151_v30  ;;  %v146_v45 = vld [vmem:[#allocation6 + $0x20] sm:$0xff] }
  0x1e   :  { %128 = vmatpush.msra.mxu1 %v87_v20  ;;  %v142_v49 = vld [vmem:[#allocation6] sm:$0xff] }
  0x1f   :  { %109 = vmatpush.msra.mxu0 %v70_v22  ;;  %169 = vmatpush.msra.mxu2 %v150_v33  ;;  %v210_v50 = vld [vmem:[%s364_s3] ss:$0 sm:$0xff]  ;;  %s190_s3 = sshll.u32 %s367_s6, 4  ;;  %s191_s3 = int_to_ptr.hbm [resolvable:$true] %s190_s3 }
  0x20   :  { %129 = vmatpush.msra.mxu1 %v86_v23  ;;  %v211_v56 = vld [vmem:[%s366_s5] ss:$0 sm:$0xff] }
  0x21   :  { %110 = vmatpush.msra.mxu0 %v69_v25  ;;  %170 = vmatpush.msra.mxu2 %v149_v36 }
  0x22   :  { %130 = vmatpush.msra.mxu1 %v85_v26 }
  0x23   :  { %111 = vmatpush.msra.mxu0 %v68_v28  ;;  %171 = vmatpush.msra.mxu2 %v148_v39 }
  0x24   :  { %131 = vmatpush.msra.mxu1 %v84_v29 }
  0x25   :  { %112 = vmatpush.msra.mxu0 %v67_v31  ;;  %172 = vmatpush.msra.mxu2 %v147_v44 }
  0x26   :  { %132 = vmatpush.msra.mxu1 %v83_v32 }
  0x27   :  { %113 = vmatpush.msra.mxu0 %v66_v34  ;;  %173 = vmatpush.msra.mxu2 %v146_v45 }
  0x28   :  { %133 = vmatpush.msra.mxu1 %v82_v35 }
  0x29   :  { %114 = vmatpush.msra.mxu0 %v65_v37  ;;  %174 = vmatpush.msra.mxu2 %v145_v46 }
  0x2a   :  { %134 = vmatpush.msra.mxu1 %v81_v38 }
  0x2b   :  { %115 = vmatpush.msra.mxu0 %v64_v40  ;;  %175 = vmatpush.msra.mxu2 %v144_v47 }
  0x2c   :  { %135 = vmatpush.msra.mxu1 %v80_v41  ;;  %116 = vmatmul.f32.vlgmr.msra.gmra.mxu0 %v58_v42 }
  0x2d   :  { %136 = vmatmul.f32.vlgmr.msra.gmra.mxu1 %v60_v43  ;;  %176 = vmatpush.msra.mxu2 %v143_v48 }
  0x2f   :  { %177 = vmatpush.msra.mxu2 %v142_v49 }
  0xa9   :  { %v117_v51 = vpop.f32.mrf.mxu0 }
  0xaa   :  { %v137_v52 = vpop.f32.mrf.mxu1  ;;  %v118_v53 = vadd.f32 %v210_v50, %v117_v51 }
  0xac   :  { %v138_v54 = vadd.f32 %v137_v52, %v118_v53 }
  0xae   :  { %212 = vtanh.f32 %v138_v54 }
  0xb4   :  { %v213_v55 = vpop.eup %212 }
  0xb5   :  { %141 = vst [vmem:[%s368_s7] sm:$0xff] %v213_v55  ;;  %178 = vmatmul.f32.vlgmr.msra.gmra.mxu2 %v213_v55 }
 0x138   :  { %v179_v57 = vpop.f32.mrf.mxu2 }
 0x139   :  { %v180_v58 = vadd.f32 %v211_v56, %v179_v57 }
 0x13b   :  { %182 = vst [vmem:[#allocation8] sm:$0xff] %v180_v58 }
 0x13c   :  { %193 = dma.vmem_to_hbm [thread:$0]  %s189_s20, 128, %s191_s3, [#allocation5]  }
 0x13d   :  { %290 = dma.done.wait [#allocation5], 128  }
 0x13e   :  { %291 = vsyncadd [#allocation5], 4294967168 }
 0x13f   :  { %202 = vsyncpa [#allocation4], 1 }
 0x140   :  { %203 = vsyncpa [#allocation7], 1 }
 0x141   :  { %204 = vsyncpa [#allocation5], 1 }

</bundles_post_ra>
